<compile_context>
chip_gen: v6e
topology: v6e:2x2x1
jax: 0.10.0
libtpu: 0.0.40
codegen_flags: <defaults>
</compile_context>

<pallas_src>
import functools

import numpy as np
import jax
import jax.numpy as jnp
from jax.experimental import pallas as pl
from jax.experimental.pallas import tpu as pltpu


def _learnable_sigmoid_kernel(beta_ref, x_ref, slope_ref, o_ref):
    # Fully fused element-wise body: VPU multiply, EUP sigmoid, VPU scale.
    beta = beta_ref[0, 0]                               # SMEM scalar
    x = x_ref[...].astype(jnp.float32)                  # in-kernel upcast only
    s = slope_ref[...]                                  # (1, F) f32, broadcasts
    o_ref[...] = (beta * jax.nn.sigmoid(s * x)).astype(o_ref.dtype)


def learnable_sigmoid_1d(x, slope, beta=1.0):
    """beta * sigmoid(slope * x); slope has shape (in_features,) = x.shape[-1].

    Output dtype matches x.dtype (no silent upcast of activations).
    """
    orig_shape = x.shape
    F = orig_shape[-1]
    assert slope.shape == (F,), (slope.shape, F)

    x2 = x.reshape(-1, F)                               # no dtype cast, no pad
    M = x2.shape[0]
    s2 = slope.astype(jnp.float32).reshape(1, F)        # tiny, resident block
    beta_arr = jnp.asarray(beta, jnp.float32).reshape(1, 1)

    # Row-tile size: target ~1 MiB of input bytes per block (kernel is purely
    # HBM-bandwidth bound), multiple of 8 sublanes, never larger than the
    # rounded-up row count.  With in+out double-buffering this stays well
    # under every generation's scoped-VMEM default (16 MiB on v5e).
    bytes_per_row = max(1, F * x2.dtype.itemsize)
    tm = max(8, ((1 << 20) // bytes_per_row) // 8 * 8)
    tm = min(tm, ((M + 7) // 8) * 8)

    grid = (pl.cdiv(M, tm),)                            # ragged last block OK

    out = pl.pallas_call(
        _learnable_sigmoid_kernel,
        out_shape=jax.ShapeDtypeStruct((M, F), x2.dtype),
        grid=grid,
        in_specs=[
            # beta: whole (1,1) array in SMEM (scalar parameter).
            pl.BlockSpec(memory_space=pltpu.MemorySpace.SMEM),
            # x rows: (tm, F) blocks; F equals the full array dim so no
            # 128-lane padding is required and no wrapper pad/slice is needed.
            pl.BlockSpec((tm, F), lambda i: (i, 0)),
            # slope: same (1, F) block every step (stays VMEM-resident).
            pl.BlockSpec((1, F), lambda i: (0, 0)),
        ],
        out_specs=pl.BlockSpec((tm, F), lambda i: (i, 0)),
        compiler_params=pltpu.CompilerParams(
            dimension_semantics=("parallel",)),
    )(beta_arr, x2, s2)

    return out.reshape(orig_shape)


if __name__ == "__main__":
    key = jax.random.PRNGKey(0)
    kx, ks = jax.random.split(key)

    # Shapes consistent with how MN_Net uses LearnableSigmoid_1d:
    # (batch, time, freq) with in_features = freq bins = 100, beta = 2.
    # T=7 makes the flattened row count (14) non-multiple-of-8 to exercise the
    # ragged / masked boundary block.
    B, T, F = 2, 7, 100
    beta = 2.0
    x = jax.random.normal(kx, (B, T, F), jnp.float32)
    slope = 1.0 + 0.1 * jax.random.normal(ks, (F,), jnp.float32)

    fwd = jax.jit(functools.partial(learnable_sigmoid_1d, beta=beta))
    y = jax.block_until_ready(fwd(x, slope))

    # Pure-JAX reference check of the module's forward semantics (f32 path).
    y_ref = beta * jax.nn.sigmoid(slope * x)
    assert y.shape == x.shape and y.dtype == x.dtype, (y.shape, y.dtype)
    np.testing.assert_allclose(np.asarray(y), np.asarray(y_ref),
                               rtol=1e-6, atol=1e-6)
    assert bool(jnp.all(jnp.isfinite(y)))

    # bf16 path: HBM I/O stays bf16, compute is f32 in-kernel.
    x_bf = x.astype(jnp.bfloat16)
    y_bf = jax.block_until_ready(fwd(x_bf, slope))
    y_bf_ref = (beta * jax.nn.sigmoid(slope * x_bf.astype(jnp.float32))
                ).astype(jnp.bfloat16)
    assert y_bf.dtype == jnp.bfloat16, y_bf.dtype
    np.testing.assert_allclose(np.asarray(y_bf, dtype=np.float32),
                               np.asarray(y_bf_ref, dtype=np.float32),
                               rtol=2e-2, atol=2e-2)

    print("KERNEL_OK")
</pallas_src>

<mosaic_0001>
module attributes {stable_mosaic.version = 11 : i64} {
  func.func @_learnable_sigmoid_kernel(%arg0: i32, %arg1: memref<1x1xf32, #tpu.memory_space<smem>>, %arg2: memref<16x100xf32, #tpu.memory_space<vmem>>, %arg3: memref<1x100xf32, #tpu.memory_space<vmem>>, %arg4: memref<16x100xf32, #tpu.memory_space<vmem>>) attributes {dimension_semantics = [#tpu.dimension_semantics<parallel>], iteration_bounds = array<i64: 1>, scalar_prefetch = 0 : i64, scratch_operands = 0 : i64, tpu.core_type = #tpu.core_type<tc>, window_params = [{transform_indices = @transform_0, window_bounds = array<i64: 1, 1>}, {transform_indices = @transform_1, window_bounds = array<i64: 16, 100>}, {pipeline_mode = #tpu.pipeline_mode<synchronous>, transform_indices = @transform_2, window_bounds = array<i64: 1, 100>}, {transform_indices = @transform_3, window_bounds = array<i64: 16, 100>}]} {
    %c0 = arith.constant 0 : index
    %c0_0 = arith.constant 0 : index
    %0 = memref.load %arg1[%c0, %c0_0] : memref<1x1xf32, #tpu.memory_space<smem>>
    %c0_1 = arith.constant 0 : index
    %c0_2 = arith.constant 0 : index
    %1 = vector.load %arg2[%c0_1, %c0_2] : memref<16x100xf32, #tpu.memory_space<vmem>>, vector<16x100xf32>
    %c0_3 = arith.constant 0 : index
    %c0_4 = arith.constant 0 : index
    %2 = vector.load %arg3[%c0_3, %c0_4] : memref<1x100xf32, #tpu.memory_space<vmem>>, vector<1x100xf32>
    %3 = vector.broadcast %2 : vector<1x100xf32> to vector<16x100xf32>
    %4 = arith.mulf %3, %1 : vector<16x100xf32>
    %5 = arith.negf %4 : vector<16x100xf32>
    %6 = math.exp %5 : vector<16x100xf32>
    %cst = arith.constant 1.000000e+00 : f32
    %7 = vector.broadcast %cst : f32 to vector<16x100xf32>
    %8 = arith.addf %7, %6 : vector<16x100xf32>
    %9 = arith.divf %7, %8 : vector<16x100xf32>
    %10 = vector.broadcast %0 : f32 to vector<16x100xf32>
    %11 = arith.mulf %10, %9 : vector<16x100xf32>
    %c0_5 = arith.constant 0 : index
    %c0_6 = arith.constant 0 : index
    %12 = vector.load %arg4[%c0_5, %c0_6] : memref<16x100xf32, #tpu.memory_space<vmem>>, vector<16x100xf32>
    tpu.vector_store %arg4[%c0_5, %c0_6], %11 {strides = array<i32>} : memref<16x100xf32, #tpu.memory_space<vmem>>, vector<16x100xf32>,
    return
  }
  func.func @transform_0(%arg0: i32) -> (i32, i32) {
    %c0_i32 = arith.constant 0 : i32
    %c0_i32_0 = arith.constant 0 : i32
    %c0_i32_1 = arith.constant 0 : i32
    return %c0_i32, %c0_i32_0 : i32, i32
  }
  func.func @transform_1(%arg0: i32) -> (i32, i32) {
    %c0_i32 = arith.constant 0 : i32
    %c0_i32_0 = arith.constant 0 : i32
    return %arg0, %c0_i32 : i32, i32
  }
  func.func @transform_2(%arg0: i32) -> (i32, i32) {
    %c0_i32 = arith.constant 0 : i32
    %c0_i32_0 = arith.constant 0 : i32
    %c0_i32_1 = arith.constant 0 : i32
    return %c0_i32, %c0_i32_0 : i32, i32
  }
  func.func @transform_3(%arg0: i32) -> (i32, i32) {
    %c0_i32 = arith.constant 0 : i32
    %c0_i32_0 = arith.constant 0 : i32
    return %arg0, %c0_i32 : i32, i32
  }
}

</mosaic_0001>

<bundles_post_ra>
// kernel: learnable_sigmoid_1d.1
= control target key start
LH: loop header
LB: loop body
LE: loop exit
PB: predicated region body
PF: predicated region fallthrough
CT: control target
= control target key end

     0   :  { %vm42_vm0 = vcmask 818176   ;;  %s98_s1 = inlined_call_operand.vmem [shape: f32[14,100], index: 1, kind: input, shape index: {}]   ;;  %s99_s2 = inlined_call_operand.vmem [shape: f32[1,100], index: 2, kind: input, shape index: {}]   ;;  %s100_s0 = inlined_call_operand.<no memory space> [shape: f32[1,1], index: 0, kind: input, shape index: {}]   ;;  %s101_s3 = inlined_call_operand.vmem [shape: f32[14,100], index: 3, kind: output, shape index: {}]  }
   0x1   :  { %v16_v0 = vld [vmem:[%s98_s1] sm:$0xff]  ;;  %v17_v2 = vld [vmem:[%s98_s1 + $0x8] sm:$0xff]  ;;  %v39_v11 = vstv %s100_s0 }
   0x2   :  { %v49_v1 = vld [vmem:[%s99_s2] ss:$0 sm:$0xff] }
   0x3   :  { %v25_v3 = vmul.f32 %v49_v1, %v16_v0  ;;  %v26_v4 = vmul.f32 %v49_v1, %v17_v2 }
   0x5   :  { %v50_v5 = vmul.f32 -1.442695, %v25_v3  ;;  %v51_v6 = vmul.f32 -1.442695, %v26_v4 }
   0x7   :  { %52 = vpow2.f32 %v50_v5 }
   0x8   :  { %54 = vpow2.f32 %v51_v6 }
  0x14   :  { %v53_v7 = vpop.eup %52 }
  0x15   :  { %v55_v8 = vpop.eup %54  ;;  %v33_v9 = vadd.f32 1.0, %v53_v7 }
  0x16   :  { %v34_v10 = vadd.f32 1.0, %v55_v8 }
  0x17   :  { %56 = vrcp.f32 %v33_v9 }
  0x18   :  { %58 = vrcp.f32 %v34_v10 }
  0x24   :  { %v57_v12 = vpop.eup %56 }
  0x25   :  { %v59_v13 = vpop.eup %58  ;;  %v40_v14 = vmul.f32 %v57_v12, %v39_v11 }
  0x26   :  { %v41_v15 = vmul.f32 %v59_v13, %v39_v11 }
  0x27   :  { %43 = vst.msk [vmem:[%s101_s3] sm:$0xff] %vm42_vm0, %v40_v14 }
  0x28   :  { %44 = vst.msk [vmem:[%s101_s3 + $0x8] sm:$0xff] %vm42_vm0, %v41_v15 }

</bundles_post_ra>
